<compile_context>
chip_gen: v7x
topology: tpu7x:2x2x1
jax: 0.10.0
libtpu: 0.0.40
codegen_flags: <defaults>
</compile_context>

<pallas_src>
import jax
import jax.numpy as jnp
import numpy as np
from jax.experimental import pallas as pl
from jax.experimental.pallas import tpu as pltpu


def _attention_kernel(atten_ref, v_ref, q_ref,
                      wv_ref, bv_ref, wq_ref, bq_ref, wa_ref, ba_ref,
                      out_ref):
    """Grid = (num_batch_tiles,). All G glimpses run inside one grid step."""
    TB, Nv, VF = v_ref.shape
    _, Nq, QF = q_ref.shape
    G = wv_ref.shape[0]
    M = wv_ref.shape[-1]

    # Collapse (TB, Nv) into the matmul row axis once: one (TB*Nv, VF) x (VF, M)
    # MXU matmul per glimpse instead of TB tiny padded ones.
    v2d = v_ref[...].reshape(TB * Nv, VF)            # compute dtype (bf16)
    q_cur = q_ref[...]                               # (TB, Nq, QF) f32, in vregs

    # Static unroll over the (small, static) glimpse count; q carried as values.
    for g in range(G):
        # --- lin_v: relu(v @ Wv_g^T + bv_g) -- weights pre-transposed (VF, M) --
        v_proj = jnp.dot(v2d, wv_ref[g],
                         preferred_element_type=jnp.float32) + bv_ref[g]
        v_proj = jnp.maximum(v_proj, 0.0).reshape(TB, Nv, M)         # f32

        # --- lin_q on the *current* q ----------------------------------------
        q2d = q_cur.reshape(TB * Nq, QF).astype(wq_ref.dtype)
        q_proj = jnp.dot(q2d, wq_ref[g],
                         preferred_element_type=jnp.float32) + bq_ref[g]
        q_proj = jnp.maximum(q_proj, 0.0).reshape(TB, Nq, M)         # f32

        # --- bilinear pooling: h[b,m] = sum_{i,j} vp[b,i,m]*A[b,i,j]*qp[b,j,m]
        # s[b,i,m] = sum_j A[b,i,j] * qp[b,j,m]: contracts A's minor-most dim
        # against q_proj's second-minor dim (standard MXU orientation, no
        # transposes). Kept entirely in f32 (tiny FLOPs, better accuracy).
        # NOTE: for production-sized Nv*M, tile this Nv/Nq contraction instead
        # of materializing v_proj / s in one shot (bounds VMEM / vreg live
        # ranges).
        a_g = atten_ref[g]                                           # (TB, Nv, Nq) f32
        s = jnp.einsum('bij,bjm->bim', a_g, q_proj,
                       preferred_element_type=jnp.float32)           # (TB, Nv, M)
        h = jnp.sum(v_proj * s, axis=1)                              # (TB, M) f32

        # --- lin_atten (no activation), broadcast add across Nq ---------------
        ah = jnp.dot(h.astype(wa_ref.dtype), wa_ref[g],
                     preferred_element_type=jnp.float32) + ba_ref[g]  # (TB, M)
        q_cur = q_cur + ah[:, None, :]

    # Final reduction over Nq; single lane- and sublane-dense store per tile.
    out_ref[...] = jnp.sum(q_cur, axis=1).astype(out_ref.dtype)


def _pick_block_b(B, block_b=None, cap=32):
    """Largest divisor of B that is <= cap and keeps the 2-D output block
    (8,128)-legal (block_b % 8 == 0 or block_b == B). Fallback: B itself."""
    if block_b is not None:
        assert B % block_b == 0, (B, block_b)
        assert block_b % 8 == 0 or block_b == B, "output block must be dense"
        return block_b
    candidates = [d for d in range(1, B + 1)
                  if B % d == 0 and d <= cap and (d % 8 == 0 or d == B)]
    return max(candidates) if candidates else B


def attention_module(v, q, atten, params, *, block_b=None,
                     compute_dtype=jnp.bfloat16):
    """v:(B,Nv,VF) q:(B,Nq,QF) atten:(B,G,Nv,Nq) -> (B,QF)."""
    B, Nv, VF = v.shape
    _, Nq, QF = q.shape
    G = atten.shape[1]
    M = params['wv'].shape[1]
    assert QF == M, "q_features must equal mid_features (broadcast add requires it)"

    block_b = _pick_block_b(B, block_b)
    nb = B // block_b

    # One-time wrapper-side layout plumbing (outside the kernel):
    #   * weights -> (in, out): the contraction dim becomes the leading dim of
    #     the RHS, so the kernel never transposes on the XLU
    #   * atten -> (G, B, Nv, Nq): glimpse dim leading (static in-kernel index),
    #     kept in f32 for the bilinear term
    #   * MXU projection operands cast to compute_dtype (bf16 by default);
    #     biases, the q recursion and all elementwise math stay f32.
    wv_t = jnp.transpose(params['wv'], (0, 2, 1)).astype(compute_dtype)   # (G,VF,M)
    wq_t = jnp.transpose(params['wq'], (0, 2, 1)).astype(compute_dtype)   # (G,QF,M)
    wa_t = jnp.transpose(params['wa'], (0, 2, 1)).astype(compute_dtype)   # (G,M,M)
    bv = params['bv'].astype(jnp.float32)                                 # (G,M)
    bq = params['bq'].astype(jnp.float32)
    ba = params['ba'].astype(jnp.float32)
    atten_t = jnp.transpose(atten, (1, 0, 2, 3)).astype(jnp.float32)      # (G,B,Nv,Nq)
    v_c = v.astype(compute_dtype)
    q_f32 = q.astype(jnp.float32)

    grid_spec = pltpu.PrefetchScalarGridSpec(
        num_scalar_prefetch=0,
        grid=(nb,),                       # batch tiles only; glimpses unrolled in-kernel
        in_specs=[
            # Per-tile activations (change every grid step -> double-buffered).
            pl.BlockSpec((G, block_b, Nv, Nq), lambda b: (0, b, 0, 0)),   # atten
            pl.BlockSpec((block_b, Nv, VF), lambda b: (b, 0, 0)),         # v
            pl.BlockSpec((block_b, Nq, QF), lambda b: (b, 0, 0)),         # q
            # Resident full weight/bias stacks: constant block index across the
            # whole grid -> DMA'd once, reused for every batch tile.
            pl.BlockSpec((G, VF, M), lambda b: (0, 0, 0)),                # Wv^T stack
            pl.BlockSpec((G, M), lambda b: (0, 0)),                       # bv stack
            pl.BlockSpec((G, QF, M), lambda b: (0, 0, 0)),                # Wq^T stack
            pl.BlockSpec((G, M), lambda b: (0, 0)),                       # bq stack
            pl.BlockSpec((G, M, M), lambda b: (0, 0, 0)),                 # Wa^T stack
            pl.BlockSpec((G, M), lambda b: (0, 0)),                       # ba stack
        ],
        # 2-D output: lane-dense (QF multiple of 128) and sublane-dense
        # (block_b % 8 == 0 or block_b == B), one unmasked store per tile.
        out_specs=pl.BlockSpec((block_b, QF), lambda b: (b, 0)),
    )

    return pl.pallas_call(
        _attention_kernel,
        out_shape=jax.ShapeDtypeStruct((B, QF), jnp.float32),
        grid_spec=grid_spec,
        # Batch tiles are independent (megacore-parallel on v7x). For
        # production sizes raise vmem_limit_bytes here if the per-tile working
        # set plus the resident weight stacks exceed the default scoped VMEM.
        compiler_params=pltpu.CompilerParams(
            dimension_semantics=("parallel",)),
    )(atten_t, v_c, q_f32, wv_t, bv, wq_t, bq, wa_t, ba)


def _weight_norm(v_param, g_param):
    # torch weight_norm with dim=None: W = g * V / ||V||_F (g is a scalar)
    return g_param * v_param / jnp.linalg.norm(v_param)


def init_params(key, v_features, q_features, mid_features, glimpses):
    """Deterministic synthetic parameters matching the module's shapes."""
    wvs, bvs, wqs, bqs, was, bas = [], [], [], [], [], []
    for gidx in range(glimpses):
        k = jax.random.fold_in(key, gidx)
        k1, k2, k3, k4, k5, k6 = jax.random.split(k, 6)
        sv = 0.5 / np.sqrt(v_features)
        sq = 0.5 / np.sqrt(q_features)
        sm = 0.5 / np.sqrt(mid_features)
        vv = jax.random.normal(k1, (mid_features, v_features), jnp.float32) * sv
        vq = jax.random.normal(k2, (mid_features, q_features), jnp.float32) * sq
        va = jax.random.normal(k3, (mid_features, mid_features), jnp.float32) * sm
        # weight_norm init: g = ||V||_F (scalar, dim=None) -> W_eff == V at init
        wvs.append(_weight_norm(vv, jnp.linalg.norm(vv)))
        wqs.append(_weight_norm(vq, jnp.linalg.norm(vq)))
        was.append(_weight_norm(va, jnp.linalg.norm(va)))
        bvs.append(jax.random.normal(k4, (mid_features,), jnp.float32) * 0.01)
        bqs.append(jax.random.normal(k5, (mid_features,), jnp.float32) * 0.01)
        bas.append(jax.random.normal(k6, (mid_features,), jnp.float32) * 0.01)
    return dict(
        wv=jnp.stack(wvs), bv=jnp.stack(bvs),
        wq=jnp.stack(wqs), bq=jnp.stack(bqs),
        wa=jnp.stack(was), ba=jnp.stack(bas),
    )


def attention_module_ref(v, q, atten, params):
    """Pure-JAX reference mirroring the PyTorch forward (f32, highest precision)."""
    G = atten.shape[1]
    hp = jax.lax.Precision.HIGHEST
    for g in range(G):
        wv, bv = params['wv'][g], params['bv'][g]
        wq, bq = params['wq'][g], params['bq'][g]
        wa, ba = params['wa'][g], params['ba'][g]
        v_proj = jax.nn.relu(jnp.einsum('bnf,mf->bnm', v, wv, precision=hp) + bv)
        q_proj = jax.nn.relu(jnp.einsum('bnf,mf->bnm', q, wq, precision=hp) + bq)
        a = atten[:, g]                                            # (B, Nv, Nq)
        t = jnp.einsum('bij,bim->bjm', a, v_proj, precision=hp)    # (B, Nq, M)
        h = jnp.sum(t * q_proj, axis=1)                            # (B, M)
        ah = jnp.einsum('bm,nm->bn', h, wa, precision=hp) + ba     # (B, M)
        q = q + ah[:, None, :]
    return q.sum(axis=1)


if __name__ == "__main__":
    B, G = 2, 2
    Nv, Nq = 16, 8
    # Lane-dense feature dims (multiples of 128); q_features must equal mid.
    v_features = q_features = mid_features = 128

    key = jax.random.PRNGKey(0)
    kv, kq, ka, kp = jax.random.split(key, 4)
    v = jax.random.normal(kv, (B, Nv, v_features), jnp.float32)
    q = jax.random.normal(kq, (B, Nq, q_features), jnp.float32)
    atten = jax.nn.softmax(
        jax.random.normal(ka, (B, G, Nv, Nq), jnp.float32), axis=-1)
    params = init_params(kp, v_features, q_features, mid_features, G)

    ref = np.asarray(jax.block_until_ready(attention_module_ref(v, q, atten, params)))

    # 1) f32 path: tight functional check of the kernel structure.
    out_f32 = attention_module(v, q, atten, params, compute_dtype=jnp.float32)
    out_f32 = np.asarray(jax.block_until_ready(out_f32))
    np.testing.assert_allclose(out_f32, ref, rtol=1e-3, atol=1e-3)

    # 2) bf16 MXU-operand path (recommended config on v6e/v7x), f32 accumulation
    #    and f32 bilinear/atten/q recursion.
    out_bf16 = attention_module(v, q, atten, params, compute_dtype=jnp.bfloat16)
    out_bf16 = np.asarray(jax.block_until_ready(out_bf16))
    scale = np.max(np.abs(ref))
    max_err = np.max(np.abs(out_bf16 - ref))
    assert max_err <= 3e-2 * scale, (max_err, scale)

    print("KERNEL_OK")
</pallas_src>

<mosaic_0001>
module attributes {stable_mosaic.version = 11 : i64} {
  func.func @_attention_kernel(%arg0: i32, %arg1: memref<2x2x16x8xf32, #tpu.memory_space<vmem>>, %arg2: memref<2x16x128xf32, #tpu.memory_space<vmem>>, %arg3: memref<2x8x128xf32, #tpu.memory_space<vmem>>, %arg4: memref<2x128x128xf32, #tpu.memory_space<vmem>>, %arg5: memref<2x128xf32, #tpu.memory_space<vmem>>, %arg6: memref<2x128x128xf32, #tpu.memory_space<vmem>>, %arg7: memref<2x128xf32, #tpu.memory_space<vmem>>, %arg8: memref<2x128x128xf32, #tpu.memory_space<vmem>>, %arg9: memref<2x128xf32, #tpu.memory_space<vmem>>, %arg10: memref<2x128xf32, #tpu.memory_space<vmem>>) attributes {dimension_semantics = [#tpu.dimension_semantics<parallel>], iteration_bounds = array<i64: 1>, scalar_prefetch = 0 : i64, scratch_operands = 0 : i64, tpu.core_type = #tpu.core_type<tc>, window_params = [{transform_indices = @transform_0, window_bounds = array<i64: 2, 2, 16, 8>}, {transform_indices = @transform_1, window_bounds = array<i64: 2, 16, 128>}, {transform_indices = @transform_2, window_bounds = array<i64: 2, 8, 128>}, {pipeline_mode = #tpu.pipeline_mode<synchronous>, transform_indices = @transform_3, window_bounds = array<i64: 2, 128, 128>}, {pipeline_mode = #tpu.pipeline_mode<synchronous>, transform_indices = @transform_4, window_bounds = array<i64: 2, 128>}, {pipeline_mode = #tpu.pipeline_mode<synchronous>, transform_indices = @transform_5, window_bounds = array<i64: 2, 128, 128>}, {pipeline_mode = #tpu.pipeline_mode<synchronous>, transform_indices = @transform_6, window_bounds = array<i64: 2, 128>}, {pipeline_mode = #tpu.pipeline_mode<synchronous>, transform_indices = @transform_7, window_bounds = array<i64: 2, 128, 128>}, {pipeline_mode = #tpu.pipeline_mode<synchronous>, transform_indices = @transform_8, window_bounds = array<i64: 2, 128>}, {transform_indices = @transform_9, window_bounds = array<i64: 2, 128>}]} {
    %c0 = arith.constant 0 : index
    %c0_0 = arith.constant 0 : index
    %c0_1 = arith.constant 0 : index
    %0 = vector.load %arg2[%c0, %c0_0, %c0_1] : memref<2x16x128xf32, #tpu.memory_space<vmem>>, vector<2x16x128xf32>
    %1 = vector.shape_cast %0 : vector<2x16x128xf32> to vector<32x128xf32>
    %c0_2 = arith.constant 0 : index
    %c0_3 = arith.constant 0 : index
    %c0_4 = arith.constant 0 : index
    %2 = vector.load %arg3[%c0_2, %c0_3, %c0_4] : memref<2x8x128xf32, #tpu.memory_space<vmem>>, vector<2x8x128xf32>
    %c0_5 = arith.constant 0 : index
    %c0_6 = arith.constant 0 : index
    %c0_7 = arith.constant 0 : index
    %3 = vector.load %arg4[%c0_5, %c0_6, %c0_7] : memref<2x128x128xf32, #tpu.memory_space<vmem>>, vector<1x128x128xf32>
    %4 = vector.shape_cast %3 : vector<1x128x128xf32> to vector<128x128xf32>
    %cst = arith.constant dense<0.000000e+00> : vector<32x128xf32>
    %5 = tpu.matmul %1, %4, %cst {dimension_numbers = #tpu.dot_dimension_numbers<[1], [0], [0], [1], [0, 0, 1, 1], [], []>} : vector<32x128xf32>, vector<128x128xf32>, vector<32x128xf32> -> vector<32x128xf32>
    %c0_8 = arith.constant 0 : index
    %c0_9 = arith.constant 0 : index
    %6 = vector.load %arg5[%c0_8, %c0_9] : memref<2x128xf32, #tpu.memory_space<vmem>>, vector<1x128xf32>
    %7 = vector.shape_cast %6 : vector<1x128xf32> to vector<128xf32>
    %8 = vector.shape_cast %7 : vector<128xf32> to vector<1x128xf32>
    %9 = vector.broadcast %8 : vector<1x128xf32> to vector<32x128xf32>
    %10 = arith.addf %5, %9 : vector<32x128xf32>
    %cst_10 = arith.constant 0.000000e+00 : f32
    %11 = vector.broadcast %cst_10 : f32 to vector<32x128xf32>
    %12 = arith.maximumf %10, %11 : vector<32x128xf32>
    %13 = vector.shape_cast %12 : vector<32x128xf32> to vector<2x16x128xf32>
    %14 = vector.shape_cast %2 : vector<2x8x128xf32> to vector<16x128xf32>
    %c0_11 = arith.constant 0 : index
    %c0_12 = arith.constant 0 : index
    %c0_13 = arith.constant 0 : index
    %15 = vector.load %arg6[%c0_11, %c0_12, %c0_13] : memref<2x128x128xf32, #tpu.memory_space<vmem>>, vector<1x128x128xf32>
    %16 = vector.shape_cast %15 : vector<1x128x128xf32> to vector<128x128xf32>
    %cst_14 = arith.constant dense<0.000000e+00> : vector<16x128xf32>
    %17 = tpu.matmul %14, %16, %cst_14 {dimension_numbers = #tpu.dot_dimension_numbers<[1], [0], [0], [1], [0, 0, 1, 1], [], []>} : vector<16x128xf32>, vector<128x128xf32>, vector<16x128xf32> -> vector<16x128xf32>
    %c0_15 = arith.constant 0 : index
    %c0_16 = arith.constant 0 : index
    %18 = vector.load %arg7[%c0_15, %c0_16] : memref<2x128xf32, #tpu.memory_space<vmem>>, vector<1x128xf32>
    %19 = vector.shape_cast %18 : vector<1x128xf32> to vector<128xf32>
    %20 = vector.shape_cast %19 : vector<128xf32> to vector<1x128xf32>
    %21 = vector.broadcast %20 : vector<1x128xf32> to vector<16x128xf32>
    %22 = arith.addf %17, %21 : vector<16x128xf32>
    %cst_17 = arith.constant 0.000000e+00 : f32
    %23 = vector.broadcast %cst_17 : f32 to vector<16x128xf32>
    %24 = arith.maximumf %22, %23 : vector<16x128xf32>
    %25 = vector.shape_cast %24 : vector<16x128xf32> to vector<2x8x128xf32>
    %c0_18 = arith.constant 0 : index
    %c0_19 = arith.constant 0 : index
    %c0_20 = arith.constant 0 : index
    %c0_21 = arith.constant 0 : index
    %26 = vector.load %arg1[%c0_18, %c0_19, %c0_20, %c0_21] : memref<2x2x16x8xf32, #tpu.memory_space<vmem>>, vector<1x2x16x8xf32>
    %27 = vector.shape_cast %26 : vector<1x2x16x8xf32> to vector<2x16x8xf32>
    "tpu.trace_start"() <{level = 10 : i32, message = "bij,bjm->bim"}> : () -> ()
    %cst_22 = arith.constant dense<0.000000e+00> : vector<2x16x128xf32>
    %28 = tpu.matmul %27, %25, %cst_22 {dimension_numbers = #tpu.dot_dimension_numbers<[2], [1], [1], [2], [0, 0, 0, 1, 1, 2], [0], [0]>} : vector<2x16x8xf32>, vector<2x8x128xf32>, vector<2x16x128xf32> -> vector<2x16x128xf32>
    "tpu.trace_stop"() : () -> ()
    %29 = arith.mulf %13, %28 : vector<2x16x128xf32>
    %cst_23 = arith.constant dense<0.000000e+00> : vector<2x128xf32>
    %30 = vector.multi_reduction <add>, %29, %cst_23 [1] : vector<2x16x128xf32> to vector<2x128xf32>
    %c0_24 = arith.constant 0 : index
    %c0_25 = arith.constant 0 : index
    %c0_26 = arith.constant 0 : index
    %31 = vector.load %arg8[%c0_24, %c0_25, %c0_26] : memref<2x128x128xf32, #tpu.memory_space<vmem>>, vector<1x128x128xf32>
    %32 = vector.shape_cast %31 : vector<1x128x128xf32> to vector<128x128xf32>
    %cst_27 = arith.constant dense<0.000000e+00> : vector<2x128xf32>
    %33 = tpu.matmul %30, %32, %cst_27 {dimension_numbers = #tpu.dot_dimension_numbers<[1], [0], [0], [1], [0, 0, 1, 1], [], []>} : vector<2x128xf32>, vector<128x128xf32>, vector<2x128xf32> -> vector<2x128xf32>
    %c0_28 = arith.constant 0 : index
    %c0_29 = arith.constant 0 : index
    %34 = vector.load %arg9[%c0_28, %c0_29] : memref<2x128xf32, #tpu.memory_space<vmem>>, vector<1x128xf32>
    %35 = vector.shape_cast %34 : vector<1x128xf32> to vector<128xf32>
    %36 = vector.shape_cast %35 : vector<128xf32> to vector<1x128xf32>
    %37 = vector.broadcast %36 : vector<1x128xf32> to vector<2x128xf32>
    %38 = arith.addf %33, %37 : vector<2x128xf32>
    %39 = vector.shape_cast %38 : vector<2x128xf32> to vector<2x1x128xf32>
    %40 = vector.broadcast %39 : vector<2x1x128xf32> to vector<2x8x128xf32>
    %41 = arith.addf %2, %40 : vector<2x8x128xf32>
    %c1 = arith.constant 1 : index
    %c0_30 = arith.constant 0 : index
    %c0_31 = arith.constant 0 : index
    %42 = vector.load %arg4[%c1, %c0_30, %c0_31] : memref<2x128x128xf32, #tpu.memory_space<vmem>>, vector<1x128x128xf32>
    %43 = vector.shape_cast %42 : vector<1x128x128xf32> to vector<128x128xf32>
    %cst_32 = arith.constant dense<0.000000e+00> : vector<32x128xf32>
    %44 = tpu.matmul %1, %43, %cst_32 {dimension_numbers = #tpu.dot_dimension_numbers<[1], [0], [0], [1], [0, 0, 1, 1], [], []>} : vector<32x128xf32>, vector<128x128xf32>, vector<32x128xf32> -> vector<32x128xf32>
    %c1_33 = arith.constant 1 : index
    %c0_34 = arith.constant 0 : index
    %45 = vector.load %arg5[%c1_33, %c0_34] : memref<2x128xf32, #tpu.memory_space<vmem>>, vector<1x128xf32>
    %46 = vector.shape_cast %45 : vector<1x128xf32> to vector<128xf32>
    %47 = vector.shape_cast %46 : vector<128xf32> to vector<1x128xf32>
    %48 = vector.broadcast %47 : vector<1x128xf32> to vector<32x128xf32>
    %49 = arith.addf %44, %48 : vector<32x128xf32>
    %cst_35 = arith.constant 0.000000e+00 : f32
    %50 = vector.broadcast %cst_35 : f32 to vector<32x128xf32>
    %51 = arith.maximumf %49, %50 : vector<32x128xf32>
    %52 = vector.shape_cast %51 : vector<32x128xf32> to vector<2x16x128xf32>
    %53 = vector.shape_cast %41 : vector<2x8x128xf32> to vector<16x128xf32>
    %c1_36 = arith.constant 1 : index
    %c0_37 = arith.constant 0 : index
    %c0_38 = arith.constant 0 : index
    %54 = vector.load %arg6[%c1_36, %c0_37, %c0_38] : memref<2x128x128xf32, #tpu.memory_space<vmem>>, vector<1x128x128xf32>
    %55 = vector.shape_cast %54 : vector<1x128x128xf32> to vector<128x128xf32>
    %cst_39 = arith.constant dense<0.000000e+00> : vector<16x128xf32>
    %56 = tpu.matmul %53, %55, %cst_39 {dimension_numbers = #tpu.dot_dimension_numbers<[1], [0], [0], [1], [0, 0, 1, 1], [], []>} : vector<16x128xf32>, vector<128x128xf32>, vector<16x128xf32> -> vector<16x128xf32>
    %c1_40 = arith.constant 1 : index
    %c0_41 = arith.constant 0 : index
    %57 = vector.load %arg7[%c1_40, %c0_41] : memref<2x128xf32, #tpu.memory_space<vmem>>, vector<1x128xf32>
    %58 = vector.shape_cast %57 : vector<1x128xf32> to vector<128xf32>
    %59 = vector.shape_cast %58 : vector<128xf32> to vector<1x128xf32>
    %60 = vector.broadcast %59 : vector<1x128xf32> to vector<16x128xf32>
    %61 = arith.addf %56, %60 : vector<16x128xf32>
    %cst_42 = arith.constant 0.000000e+00 : f32
    %62 = vector.broadcast %cst_42 : f32 to vector<16x128xf32>
    %63 = arith.maximumf %61, %62 : vector<16x128xf32>
    %64 = vector.shape_cast %63 : vector<16x128xf32> to vector<2x8x128xf32>
    %c1_43 = arith.constant 1 : index
    %c0_44 = arith.constant 0 : index
    %c0_45 = arith.constant 0 : index
    %c0_46 = arith.constant 0 : index
    %65 = vector.load %arg1[%c1_43, %c0_44, %c0_45, %c0_46] : memref<2x2x16x8xf32, #tpu.memory_space<vmem>>, vector<1x2x16x8xf32>
    %66 = vector.shape_cast %65 : vector<1x2x16x8xf32> to vector<2x16x8xf32>
    "tpu.trace_start"() <{level = 10 : i32, message = "bij,bjm->bim"}> : () -> ()
    %cst_47 = arith.constant dense<0.000000e+00> : vector<2x16x128xf32>
    %67 = tpu.matmul %66, %64, %cst_47 {dimension_numbers = #tpu.dot_dimension_numbers<[2], [1], [1], [2], [0, 0, 0, 1, 1, 2], [0], [0]>} : vector<2x16x8xf32>, vector<2x8x128xf32>, vector<2x16x128xf32> -> vector<2x16x128xf32>
    "tpu.trace_stop"() : () -> ()
    %68 = arith.mulf %52, %67 : vector<2x16x128xf32>
    %cst_48 = arith.constant dense<0.000000e+00> : vector<2x128xf32>
    %69 = vector.multi_reduction <add>, %68, %cst_48 [1] : vector<2x16x128xf32> to vector<2x128xf32>
    %c1_49 = arith.constant 1 : index
    %c0_50 = arith.constant 0 : index
    %c0_51 = arith.constant 0 : index
    %70 = vector.load %arg8[%c1_49, %c0_50, %c0_51] : memref<2x128x128xf32, #tpu.memory_space<vmem>>, vector<1x128x128xf32>
    %71 = vector.shape_cast %70 : vector<1x128x128xf32> to vector<128x128xf32>
    %cst_52 = arith.constant dense<0.000000e+00> : vector<2x128xf32>
    %72 = tpu.matmul %69, %71, %cst_52 {dimension_numbers = #tpu.dot_dimension_numbers<[1], [0], [0], [1], [0, 0, 1, 1], [], []>} : vector<2x128xf32>, vector<128x128xf32>, vector<2x128xf32> -> vector<2x128xf32>
    %c1_53 = arith.constant 1 : index
    %c0_54 = arith.constant 0 : index
    %73 = vector.load %arg9[%c1_53, %c0_54] : memref<2x128xf32, #tpu.memory_space<vmem>>, vector<1x128xf32>
    %74 = vector.shape_cast %73 : vector<1x128xf32> to vector<128xf32>
    %75 = vector.shape_cast %74 : vector<128xf32> to vector<1x128xf32>
    %76 = vector.broadcast %75 : vector<1x128xf32> to vector<2x128xf32>
    %77 = arith.addf %72, %76 : vector<2x128xf32>
    %78 = vector.shape_cast %77 : vector<2x128xf32> to vector<2x1x128xf32>
    %79 = vector.broadcast %78 : vector<2x1x128xf32> to vector<2x8x128xf32>
    %80 = arith.addf %41, %79 : vector<2x8x128xf32>
    %cst_55 = arith.constant dense<0.000000e+00> : vector<2x128xf32>
    %81 = vector.multi_reduction <add>, %80, %cst_55 [1] : vector<2x8x128xf32> to vector<2x128xf32>
    %c0_56 = arith.constant 0 : index
    %c0_57 = arith.constant 0 : index
    %82 = vector.load %arg10[%c0_56, %c0_57] : memref<2x128xf32, #tpu.memory_space<vmem>>, vector<2x128xf32>
    tpu.vector_store %arg10[%c0_56, %c0_57], %81 {strides = array<i32>} : memref<2x128xf32, #tpu.memory_space<vmem>>, vector<2x128xf32>,
    return
  }
  func.func @transform_0(%arg0: i32) -> (i32, i32, i32, i32) {
    %c0_i32 = arith.constant 0 : i32
    %c0_i32_0 = arith.constant 0 : i32
    %c0_i32_1 = arith.constant 0 : i32
    %c0_i32_2 = arith.constant 0 : i32
    return %c0_i32, %arg0, %c0_i32_0, %c0_i32_1 : i32, i32, i32, i32
  }
  func.func @transform_1(%arg0: i32) -> (i32, i32, i32) {
    %c0_i32 = arith.constant 0 : i32
    %c0_i32_0 = arith.constant 0 : i32
    %c0_i32_1 = arith.constant 0 : i32
    return %arg0, %c0_i32, %c0_i32_0 : i32, i32, i32
  }
  func.func @transform_2(%arg0: i32) -> (i32, i32, i32) {
    %c0_i32 = arith.constant 0 : i32
    %c0_i32_0 = arith.constant 0 : i32
    %c0_i32_1 = arith.constant 0 : i32
    return %arg0, %c0_i32, %c0_i32_0 : i32, i32, i32
  }
  func.func @transform_3(%arg0: i32) -> (i32, i32, i32) {
    %c0_i32 = arith.constant 0 : i32
    %c0_i32_0 = arith.constant 0 : i32
    %c0_i32_1 = arith.constant 0 : i32
    %c0_i32_2 = arith.constant 0 : i32
    return %c0_i32, %c0_i32_0, %c0_i32_1 : i32, i32, i32
  }
  func.func @transform_4(%arg0: i32) -> (i32, i32) {
    %c0_i32 = arith.constant 0 : i32
    %c0_i32_0 = arith.constant 0 : i32
    %c0_i32_1 = arith.constant 0 : i32
    return %c0_i32, %c0_i32_0 : i32, i32
  }
  func.func @transform_5(%arg0: i32) -> (i32, i32, i32) {
    %c0_i32 = arith.constant 0 : i32
    %c0_i32_0 = arith.constant 0 : i32
    %c0_i32_1 = arith.constant 0 : i32
    %c0_i32_2 = arith.constant 0 : i32
    return %c0_i32, %c0_i32_0, %c0_i32_1 : i32, i32, i32
  }
  func.func @transform_6(%arg0: i32) -> (i32, i32) {
    %c0_i32 = arith.constant 0 : i32
    %c0_i32_0 = arith.constant 0 : i32
    %c0_i32_1 = arith.constant 0 : i32
    return %c0_i32, %c0_i32_0 : i32, i32
  }
  func.func @transform_7(%arg0: i32) -> (i32, i32, i32) {
    %c0_i32 = arith.constant 0 : i32
    %c0_i32_0 = arith.constant 0 : i32
    %c0_i32_1 = arith.constant 0 : i32
    %c0_i32_2 = arith.constant 0 : i32
    return %c0_i32, %c0_i32_0, %c0_i32_1 : i32, i32, i32
  }
  func.func @transform_8(%arg0: i32) -> (i32, i32) {
    %c0_i32 = arith.constant 0 : i32
    %c0_i32_0 = arith.constant 0 : i32
    %c0_i32_1 = arith.constant 0 : i32
    return %c0_i32, %c0_i32_0 : i32, i32
  }
  func.func @transform_9(%arg0: i32) -> (i32, i32) {
    %c0_i32 = arith.constant 0 : i32
    %c0_i32_0 = arith.constant 0 : i32
    return %arg0, %c0_i32 : i32, i32
  }
}

</mosaic_0001>

<bundles_post_ra>
// kernel: tpu_custom_call.1
= control target key start
LH: loop header
LB: loop body
LE: loop exit
PB: predicated region body
PF: predicated region fallthrough
CT: control target
= control target key end

     0   :  { %14 = vsyncpa [#allocation3], 0  ;;  %s2088_s0 = inlined_call_operand.vmem [shape: f32[2,2,16,8], index: 0, kind: input, shape index: {}]   ;;  %s2089_s1 = inlined_call_operand.vmem [shape: f32[2,16,128], index: 1, kind: input, shape index: {}]   ;;  %s2090_s2 = inlined_call_operand.vmem [shape: f32[2,8,128], index: 2, kind: input, shape index: {}]   ;;  %s2091_s3 = inlined_call_operand.hbm [shape: f32[2,128,128], index: 3, kind: input, shape index: {}]   ;;  %s2092_s4 = inlined_call_operand.vmem [shape: f32[2,128], index: 4, kind: input, shape index: {}]   ;;  %s2093_s5 = inlined_call_operand.hbm [shape: f32[2,128,128], index: 5, kind: input, shape index: {}]   ;;  %s2094_s6 = inlined_call_operand.vmem [shape: f32[2,128], index: 6, kind: input, shape index: {}]   ;;  %s2095_s7 = inlined_call_operand.hbm [shape: f32[2,128,128], index: 7, kind: input, shape index: {}]   ;;  %s2096_s8 = inlined_call_operand.vmem [shape: f32[2,128], index: 8, kind: input, shape index: {}]   ;;  %s2097_s9 = inlined_call_operand.hbm [shape: f32[2,128], index: 9, kind: output, shape index: {}]  }
   0x1   :  { %15 = vsyncpa [#allocation6], 0 }
   0x2   :  { %16 = vsyncpa [#allocation4], 0  ;;  %s1819_s30 = smov [#allocation5]   ;;  %s1820_s11 = smov [#allocation2]  }
   0x3   :  { %s42_s10 = sshll.u32 %s1819_s30, 4  ;;  %s28_s12 = sshll.u32 %s1820_s11, 4  ;;  %s43_s10 = int_to_ptr.vmem [resolvable:$true] %s42_s10  ;;  %s1879_s12 = int_to_ptr.vmem [resolvable:$true] %s28_s12 }
   0x4   :  { %s1725_s15 = scalar_lea.hbm %s2093_s5, 4096 }
   0x5   :  { %p1726_p0 = scmp.ne.s32.totalorder %s2093_s5, %s1725_s15  ;;  %p1729_p1 = scmp.lt.u32.totalorder %s1725_s15, %s2093_s5 }
   0x7   :  { %p1731_p2 = pnand %p1729_p1, %p1726_p0 }
   0x9   :  { %1734 = shalt.err (!%p1731_p2)
}
   0xa   :  { %s1735_s20 = scalar_lea.vmem %s43_s10, 4096  ;;  %p1740_p4 = scmp.lt.s32.totalorder %s43_s10, %s43_s10 }
   0xb   :  { %p1736_p3 = scmp.ne.s32.totalorder %s43_s10, %s1735_s20  ;;  %p1741_p5 = scmp.lt.s32.totalorder %s1735_s20, %s1735_s20 }
   0xd   :  { %p1742_p6 = por %p1741_p5, %p1740_p4 }
   0xf   :  { %p1743_p7 = pnand %p1742_p6, %p1736_p3 }
  0x11   :  { %1746 = shalt.err (!%p1743_p7)
}
  0x12   :  { %s1821_s21 = smov 128   ;;  %s1822_s22 = smov 8  }
  0x13   :  { %48 = dma.hbm_to_vmem [thread:$0]  %s2093_s5, 4096, %s43_s10, [#allocation6], %s1821_s21, %s1821_s21, %s1822_s22  }
  0x14   :  { %s1747_s27 = scalar_lea.hbm %s2091_s3, 4096 }
  0x15   :  { %p1748_p8 = scmp.ne.s32.totalorder %s2091_s3, %s1747_s27  ;;  %p1751_p9 = scmp.lt.u32.totalorder %s1747_s27, %s2091_s3 }
  0x17   :  { %p1753_p10 = pnand %p1751_p9, %p1748_p8 }
  0x19   :  { %1756 = shalt.err (!%p1753_p10)
}
  0x1a   :  { %s1757_s13 = scalar_lea.vmem %s1879_s12, 4096  ;;  %p1762_p12 = scmp.lt.s32.totalorder %s1879_s12, %s1879_s12 }
  0x1b   :  { %p1758_p11 = scmp.ne.s32.totalorder %s1879_s12, %s1757_s13  ;;  %p1763_p13 = scmp.lt.s32.totalorder %s1757_s13, %s1757_s13 }
  0x1d   :  { %p1764_p0 = por %p1763_p13, %p1762_p12 }
  0x1f   :  { %p1765_p1 = pnand %p1764_p0, %p1758_p11 }
  0x21   :  { %1768 = shalt.err (!%p1765_p1)
}
  0x22   :  { %34 = dma.hbm_to_vmem [thread:$0]  %s2091_s3, 4096, %s1879_s12, [#allocation3], %s1821_s21, %s1821_s21, %s1822_s22  }
  0x23   :  { %s1823_s14 = smov [#allocation7]   ;;  %s1769_s18 = scalar_lea.hbm %s2095_s7, 4096 }
  0x24   :  { %s56_s15 = sshll.u32 %s1823_s14, 4  ;;  %p1770_p2 = scmp.ne.s32.totalorder %s2095_s7, %s1769_s18  ;;  %s57_s15 = int_to_ptr.vmem [resolvable:$true] %s56_s15 }
  0x25   :  { %p1773_p3 = scmp.lt.u32.totalorder %s1769_s18, %s2095_s7 }
  0x27   :  { %p1775_p4 = pnand %p1773_p3, %p1770_p2 }
  0x29   :  { %1778 = shalt.err (!%p1775_p4)
}
  0x2a   :  { %s1779_s25 = scalar_lea.vmem %s57_s15, 4096  ;;  %p1784_p6 = scmp.lt.s32.totalorder %s57_s15, %s57_s15 }
  0x2b   :  { %p1780_p5 = scmp.ne.s32.totalorder %s57_s15, %s1779_s25  ;;  %p1785_p7 = scmp.lt.s32.totalorder %s1779_s25, %s1779_s25 }
  0x2d   :  { %p1786_p8 = por %p1785_p7, %p1784_p6 }
  0x2f   :  { %p1787_p9 = pnand %p1786_p8, %p1780_p5 }
  0x31   :  { %1790 = shalt.err (!%p1787_p9)
}
  0x32   :  { %62 = dma.hbm_to_vmem [thread:$0]  %s2095_s7, 4096, %s57_s15, [#allocation6], %s1821_s21, %s1821_s21, %s1822_s22  }
  0x33   :  { %1813 = dma.done.wait [#allocation3], 4096  }
  0x34   :  { %1814 = vsyncadd [#allocation3], 4294963200 }
  0x35   :  { %1815 = dma.done.wait [#allocation6], 8192  }
  0x36   :  { %1816 = vsyncadd [#allocation6], 4294959104  ;;  %v190_v0 = vld [vmem:[#allocation5] sm:$0xff]  ;;  %v191_v1 = vld [vmem:[#allocation5 + $0x8] sm:$0xff]  ;;  %vm292_vm0 = vcmask 64512   ;;  %vm1825_vm1 = vmmov 0  }
  0x37   :  { %v192_v2 = vld [vmem:[#allocation5 + $0x10] sm:$0xff]  ;;  %v1571_v3 = vpack.c.bf16 %v191_v1, %v190_v0  ;;  %v193_v4 = vld [vmem:[#allocation5 + $0x18] sm:$0xff]  ;;  %v194_v6 = vld [vmem:[#allocation5 + $0x20] sm:$0xff]  ;;  %vm496_vm2 = vcmask 1041409  }
  0x38   :  { %v1575_v5 = vpack.c.bf16 %v193_v4, %v192_v2  ;;  %v195_v7 = vld [vmem:[#allocation5 + $0x28] sm:$0xff]  ;;  %v196_v9 = vld [vmem:[#allocation5 + $0x30] sm:$0xff]  ;;  %v197_v10 = vld [vmem:[#allocation5 + $0x38] sm:$0xff]  ;;  %v1824_v4 = vmov 0.0|0.0  }
  0x39   :  { %1572 = vmatprep.subr.bf16.mxu1 %v1571_v3  ;;  %v1579_v8 = vpack.c.bf16 %v195_v7, %v194_v6  ;;  %v1934_v11 = vld [vmem:[%s2090_s2] sm:$0xff]  ;;  %v81_v13 = vld [vmem:[#allocation2 + $0x8] sm:$0xff]  ;;  %v82_v14 = vld [vmem:[#allocation2 + $0x10] sm:$0xff]  ;;  %v1583_v20 = vpack.c.bf16 %v197_v10, %v196_v9 }
  0x3a   :  { %1574 = vmatpush3.bf16.msra.mxu1 %v1571_v3  ;;  %1373 = vmatprep.mubr.f32.mxu1 %v1934_v11  ;;  %v80_v12 = vld [vmem:[#allocation2] sm:$0xff]  ;;  %v83_v16 = vld [vmem:[#allocation2 + $0x18] sm:$0xff]  ;;  %v85_v19 = vld [vmem:[#allocation2 + $0x28] sm:$0xff] }
  0x3b   :  { %1576 = vmatprep.subr.bf16.mxu1 %v1575_v5  ;;  %v1539_v15 = vpack.c.bf16 %v81_v13, %v80_v12  ;;  %v1543_v17 = vpack.c.bf16 %v83_v16, %v82_v14  ;;  %v84_v18 = vld [vmem:[#allocation2 + $0x20] sm:$0xff]  ;;  %v199_v22 = vld [vmem:[#allocation5 + $0x48] sm:$0xff]  ;;  %v86_v24 = vld [vmem:[#allocation2 + $0x30] sm:$0xff] }
  0x3c   :  { %v198_v21 = vld [vmem:[#allocation5 + $0x40] sm:$0xff]  ;;  %v1547_v23 = vpack.c.bf16 %v85_v19, %v84_v18  ;;  %v87_v25 = vld [vmem:[#allocation2 + $0x38] sm:$0xff]  ;;  %v200_v27 = vld [vmem:[#allocation5 + $0x50] sm:$0xff] }
  0x3d   :  { %1540 = vmatprep.subr.bf16.mxu0 %v1539_v15  ;;  %v1587_v26 = vpack.c.bf16 %v199_v22, %v198_v21  ;;  %v201_v28 = vld [vmem:[#allocation5 + $0x58] sm:$0xff]  ;;  %v1551_v29 = vpack.c.bf16 %v87_v25, %v86_v24  ;;  %v88_v30 = vld [vmem:[#allocation2 + $0x40] sm:$0xff]  ;;  %v89_v31 = vld [vmem:[#allocation2 + $0x48] sm:$0xff] }
  0x3e   :  { %1578 = vmatpush3.bf16.msra.mxu1 %v1575_v5  ;;  %1542 = vmatpush3.bf16.msra.mxu0 %v1539_v15  ;;  %v1591_v32 = vpack.c.bf16 %v201_v28, %v200_v27  ;;  %v202_v33 = vld [vmem:[#allocation5 + $0x60] sm:$0xff]  ;;  %v203_v34 = vld [vmem:[#allocation5 + $0x68] sm:$0xff]  ;;  %v1555_v35 = vpack.c.bf16 %v89_v31, %v88_v30  ;;  %v90_v36 = vld [vmem:[#allocation2 + $0x50] sm:$0xff]  ;;  %v1826_v31 = vmov 0.0  }
  0x3f   :  { %1580 = vmatprep.subr.bf16.mxu1 %v1579_v8  ;;  %1544 = vmatprep.subr.bf16.mxu0 %v1543_v17  ;;  %v91_v37 = vld [vmem:[#allocation2 + $0x58] sm:$0xff]  ;;  %v1595_v38 = vpack.c.bf16 %v203_v34, %v202_v33  ;;  %v204_v39 = vld [vmem:[#allocation5 + $0x70] sm:$0xff]  ;;  %v92_v42 = vld [vmem:[#allocation2 + $0x60] sm:$0xff] }
  0x40   :  { %v205_v40 = vld [vmem:[#allocation5 + $0x78] sm:$0xff]  ;;  %v1559_v41 = vpack.c.bf16 %v91_v37, %v90_v36  ;;  %v93_v43 = vld [vmem:[#allocation2 + $0x68] sm:$0xff]  ;;  %v94_v46 = vld [vmem:[#allocation2 + $0x70] sm:$0xff] }
  0x41   :  { %v1599_v44 = vpack.c.bf16 %v205_v40, %v204_v39  ;;  %v1563_v45 = vpack.c.bf16 %v93_v43, %v92_v42  ;;  %v95_v47 = vld [vmem:[#allocation2 + $0x78] sm:$0xff]  ;;  %v1940_v49 = vld [vmem:[%s2090_s2 + $0x8] sm:$0xff]  ;;  %v74_v50 = vld [vmem:[%s2089_s1] sm:$0xff] }
  0x42   :  { %1582 = vmatpush3.bf16.msra.mxu1 %v1579_v8  ;;  %1546 = vmatpush3.bf16.msra.mxu0 %v1543_v17  ;;  %v1567_v48 = vpack.c.bf16 %v95_v47, %v94_v46  ;;  %v1949_v51 = vld [vmem:[%s2089_s1 + $0x8] sm:$0xff]  ;;  %v1955_v52 = vld [vmem:[%s2089_s1 + $0x10] sm:$0xff]  ;;  %v1961_v53 = vld [vmem:[%s2089_s1 + $0x18] sm:$0xff] }
  0x43   :  { %1584 = vmatprep.subr.bf16.mxu1 %v1583_v20  ;;  %1548 = vmatprep.subr.bf16.mxu0 %v1547_v23  ;;  %v288_v54 = vld [vmem:[%s2088_s0] sm:$0xff]  ;;  %v289_v61 = vld [vmem:[%s2088_s0 + $0x8] sm:$0xff]  ;;  %v290_v63 = vld [vmem:[%s2088_s0 + $0x10] sm:$0xff] }
  0x44   :  { %1335 = vmatprep.mubr.f32.mxu0 %v74_v50  ;;  %v1164_v55 = vld [vmem:[%s2094_s6] ss:$0 sm:$0xff]  ;;  %v474_v1 = vld [vmem:[#allocation7 + $0x8] sm:$0xff]  ;;  %v291_v2 = vld [vmem:[%s2088_s0 + $0x18] sm:$0xff] }
  0x45   :  { %v473_v0 = vld [vmem:[#allocation7] sm:$0xff]  ;;  %v475_v5 = vld [vmem:[#allocation7 + $0x10] sm:$0xff]  ;;  %v476_v6 = vld [vmem:[#allocation7 + $0x18] sm:$0xff] }
  0x46   :  { %1586 = vmatpush3.bf16.msra.mxu1 %v1583_v20  ;;  %1550 = vmatpush3.bf16.msra.mxu0 %v1547_v23  ;;  %v1604_v3 = vpack.c.bf16 %v474_v1, %v473_v0  ;;  %v1607_v7 = vpack.c.bf16 %v476_v6, %v475_v5  ;;  %v477_v10 = vld [vmem:[#allocation7 + $0x20] sm:$0xff]  ;;  %v478_v12 = vld [vmem:[#allocation7 + $0x28] sm:$0xff]  ;;  %v479_v16 = vld [vmem:[#allocation7 + $0x30] sm:$0xff] }
  0x47   :  { %1588 = vmatprep.subr.bf16.mxu1 %v1587_v26  ;;  %1552 = vmatprep.subr.bf16.mxu0 %v1551_v29  ;;  %v1610_v13 = vpack.c.bf16 %v478_v12, %v477_v10  ;;  %v480_v17 = vld [vmem:[#allocation7 + $0x38] sm:$0xff]  ;;  %v481_v19 = vld [vmem:[#allocation7 + $0x40] sm:$0xff]  ;;  %v482_v20 = vld [vmem:[#allocation7 + $0x48] sm:$0xff] }
  0x48   :  { %v1613_v18 = vpack.c.bf16 %v480_v17, %v479_v16  ;;  %v1616_v21 = vpack.c.bf16 %v482_v20, %v481_v19  ;;  %v483_v22 = vld [vmem:[#allocation7 + $0x50] sm:$0xff]  ;;  %v484_v23 = vld [vmem:[#allocation7 + $0x58] sm:$0xff]  ;;  %v485_v25 = vld [vmem:[#allocation7 + $0x60] sm:$0xff] }
  0x49   :  { %v1619_v24 = vpack.c.bf16 %v484_v23, %v483_v22  ;;  %v487_v28 = vld [vmem:[#allocation7 + $0x70] sm:$0xff]  ;;  %v717_v33 = vld [vmem:[#allocation5 + $0x88] sm:$0xff]  ;;  %v719_v6 = vld [vmem:[#allocation5 + $0x98] sm:$0xff] }
  0x4a   :  { %1590 = vmatpush3.bf16.msra.mxu1 %v1587_v26  ;;  %1554 = vmatpush3.bf16.msra.mxu0 %v1551_v29  ;;  %v486_v26 = vld [vmem:[#allocation7 + $0x68] sm:$0xff]  ;;  %v488_v29 = vld [vmem:[#allocation7 + $0x78] sm:$0xff]  ;;  %v718_v5 = vld [vmem:[#allocation5 + $0x90] sm:$0xff] }
  0x4b   :  { %1592 = vmatprep.subr.bf16.mxu1 %v1591_v32  ;;  %1556 = vmatprep.subr.bf16.mxu0 %v1555_v35  ;;  %v1622_v27 = vpack.c.bf16 %v486_v26, %v485_v25  ;;  %v1625_v30 = vpack.c.bf16 %v488_v29, %v487_v28  ;;  %v720_v12 = vld [vmem:[#allocation5 + $0xa0] sm:$0xff]  ;;  %v723_v16 = vld [vmem:[#allocation5 + $0xb8] sm:$0xff]  ;;  %v725_v19 = vld [vmem:[#allocation5 + $0xc8] sm:$0xff] }
  0x4c   :  { %v727_v22 = vld [vmem:[#allocation5 + $0xd8] sm:$0xff]  ;;  %v729_v25 = vld [vmem:[#allocation5 + $0xe8] sm:$0xff] }
  0x4d   :  { %v731_v28 = vld [vmem:[#allocation5 + $0xf8] sm:$0xff] }
  0x4e   :  { %1594 = vmatpush3.bf16.msra.mxu1 %v1591_v32  ;;  %1558 = vmatpush3.bf16.msra.mxu0 %v1555_v35  ;;  %v716_v32 = vld [vmem:[#allocation5 + $0x80] sm:$0xff] }
  0x4f   :  { %1596 = vmatprep.subr.bf16.mxu1 %v1595_v38  ;;  %1560 = vmatprep.subr.bf16.mxu0 %v1559_v41  ;;  %v1659_v34 = vpack.c.bf16 %v717_v33, %v716_v32  ;;  %v1163_v35 = vld [vmem:[%s2092_s4] ss:$0 sm:$0xff]  ;;  %v606_v32 = vld [vmem:[#allocation2 + $0x88] sm:$0xff]  ;;  %v607_v33 = vld [vmem:[#allocation2 + $0x90] sm:$0xff] }
  0x52   :  { %1598 = vmatpush3.bf16.msra.mxu1 %v1595_v38  ;;  %1562 = vmatpush3.bf16.msra.mxu0 %v1559_v41 }
  0x53   :  { %1600 = vmatprep.subr.bf16.mxu1 %v1599_v44  ;;  %1564 = vmatprep.subr.bf16.mxu0 %v1563_v45 }
  0x56   :  { %1602 = vmatpush3.bf16.msra.mxu1 %v1599_v44  ;;  %1566 = vmatpush3.bf16.msra.mxu0 %v1563_v45 }
  0x57   :  { %1568 = vmatprep.subr.bf16.mxu0 %v1567_v48 }
  0x59   :  { %1374 = vmatmul.mubr.f32.vlgmr.msra.gmra.mrb[0].mxu1 %v1940_v49 }
  0x5a   :  { %1570 = vmatpush3.bf16.msra.mxu0 %v1567_v48  ;;  %1378 = vmatprep.mubr.msk.f32.mxu1 %vm292_vm0, %v288_v54 }
  0x5d   :  { %1336 = vmatmul.mubr.f32.vlgmr.msra.gmra.mrb[0].mxu0 %v1949_v51 }
  0x5e   :  { %1338 = vmatprep.mubr.f32.mxu0 %v1955_v52 }
  0x61   :  { %1339 = vmatmul.mubr.f32.gmra.mrb[2].mxu0 %v1961_v53 }
  0x62   :  { %1453 = vmatprep.mubr.f32.mxu0 %v74_v50 }
 0x12c   :  { %v1375_v56 = vpop.f32.mrb[0].mxu1 }
 0x12d   :  { %v277_v57 = vpop.f32.mrb[1].mxu1  ;;  %v283_v58 = vadd.f32 %v1375_v56, %v1164_v55 }
 0x12e   :  { %v278_v59 = vadd.f32 %v1164_v55, %v277_v57 }
 0x12f   :  { %v287_v62 = vmax.f32 %v283_v58, 0.0 }
 0x130   :  { %v286_v60 = vmax.f32 %v278_v59, 0.0  ;;  %v1337_v8 = vpop.f32.mrb[0].mxu0 }
 0x131   :  { %v167_v9 = vpop.f32.mrb[1].mxu0  ;;  %v173_v36 = vadd.f32 %v1337_v8, %v1163_v35 }
 0x132   :  { %1376 = vmatprep.subr.mxu1 %v286_v60  ;;  %v168_v37 = vadd.f32 %v1163_v35, %v167_v9  ;;  %v1663_v9 = vpack.c.bf16 %v719_v6, %v718_v5 }
 0x133   :  { %1377 = vmatpush3.msra.mxu1 %v286_v60  ;;  %v187_v38 = vmax.f32 %v173_v36, 0.0 }
 0x134   :  { %1379 = vmatmul.mubr.msk.f32.vlgmr.msra.gmra.mrb[2].mxu1 %vm292_vm0, %v289_v61  ;;  %1381 = vmatprep.subr.mxu1 %v287_v62  ;;  %v1340_v14 = vpop.f32.mrb[2].mxu0  ;;  %v186_v40 = vmax.f32 %v168_v37, 0.0  ;;  %v609_v37 = vld [vmem:[#allocation2 + $0xa0] sm:$0xff] }
 0x135   :  { %1382 = vmatpush3.msra.mxu1 %v287_v62  ;;  %1383 = vmatprep.mubr.msk.f32.mxu1 %vm292_vm0, %v290_v63  ;;  %v177_v15 = vpop.f32.mrb[3].mxu0  ;;  %v183_v39 = vadd.f32 %v1340_v14, %v1163_v35 }
 0x136   :  { %1603 = vmatprep.subr.bf16.mxu1 %v1824_v4  ;;  %v178_v41 = vadd.f32 %v1163_v35, %v177_v15  ;;  %v722_v15 = vld [vmem:[#allocation5 + $0xb0] sm:$0xff]  ;;  %v608_v35 = vld [vmem:[#allocation2 + $0x98] sm:$0xff] }
 0x137   :  { %v189_v43 = vmax.f32 %v183_v39, 0.0  ;;  %v1671_v17 = vpack.c.bf16 %v723_v16, %v722_v15  ;;  %v1631_v36 = vpack.c.bf16 %v608_v35, %v607_v33  ;;  %v1004_v33 = vld [vmem:[#allocation7 + $0xa0] sm:$0xff] }
 0x138   :  { %1384 = vmatmul.mubr.msk.f32.vlgmr.msra.gmra.mrb[4].mxu1 %vm292_vm0, %v291_v2  ;;  %v188_v46 = vmax.f32 %v178_v41, 0.0  ;;  %v612_v41 = vld [vmem:[#allocation2 + $0xb8] sm:$0xff] }
 0x139   :  { %1605 = vmatpush3.bf16.msra.mxu1 %v1604_v3  ;;  %1418 = vmatprep.mubr.msk.f32.mxu1 %vm1825_vm1, %v1826_v31 }
 0x13a   :  { %1606 = vmatprep.subr.bf16.mxu1 %v1824_v4 }
 0x13d   :  { %1608 = vmatpush3.bf16.msra.mxu1 %v1607_v7 }
 0x13e   :  { %1609 = vmatprep.subr.bf16.mxu1 %v1824_v4 }
 0x141   :  { %1611 = vmatpush3.bf16.msra.mxu1 %v1610_v13  ;;  %v721_v13 = vld [vmem:[#allocation5 + $0xa8] sm:$0xff] }
 0x142   :  { %1612 = vmatprep.subr.bf16.mxu1 %v1824_v4  ;;  %v1667_v14 = vpack.c.bf16 %v721_v13, %v720_v12  ;;  %v1172_v13 = vld [vmem:[%s2088_s0 + $0x20] sm:$0xff] }
 0x145   :  { %1614 = vmatpush3.bf16.msra.mxu1 %v1613_v18  ;;  %v724_v18 = vld [vmem:[#allocation5 + $0xc0] sm:$0xff] }
 0x146   :  { %1615 = vmatprep.subr.bf16.mxu1 %v1824_v4  ;;  %v1675_v20 = vpack.c.bf16 %v725_v19, %v724_v18 }
 0x149   :  { %1617 = vmatpush3.bf16.msra.mxu1 %v1616_v21  ;;  %v726_v21 = vld [vmem:[#allocation5 + $0xd0] sm:$0xff] }
 0x14a   :  { %1618 = vmatprep.subr.bf16.mxu1 %v1824_v4  ;;  %v1679_v23 = vpack.c.bf16 %v727_v22, %v726_v21  ;;  %v1173_v22 = vld [vmem:[%s2088_s0 + $0x28] sm:$0xff] }
 0x14d   :  { %1620 = vmatpush3.bf16.msra.mxu1 %v1619_v24  ;;  %v728_v24 = vld [vmem:[#allocation5 + $0xe0] sm:$0xff] }
 0x14e   :  { %1621 = vmatprep.subr.bf16.mxu1 %v1824_v4  ;;  %v1683_v26 = vpack.c.bf16 %v729_v25, %v728_v24  ;;  %v1174_v24 = vld [vmem:[%s2088_s0 + $0x30] sm:$0xff]  ;;  %v1000_v25 = vld [vmem:[#allocation7 + $0x80] sm:$0xff] }
 0x151   :  { %1623 = vmatpush3.bf16.msra.mxu1 %v1622_v27  ;;  %v730_v27 = vld [vmem:[#allocation5 + $0xf0] sm:$0xff] }
 0x152   :  { %1624 = vmatprep.subr.bf16.mxu1 %v1824_v4  ;;  %v1687_v29 = vpack.c.bf16 %v731_v28, %v730_v27  ;;  %v1175_v27 = vld [vmem:[%s2088_s0 + $0x38] sm:$0xff] }
 0x155   :  { %1626 = vmatpush3.bf16.msra.mxu1 %v1625_v30  ;;  %v605_v30 = vld [vmem:[#allocation2 + $0x80] sm:$0xff] }
 0x156   :  { %1660 = vmatprep.subr.bf16.mxu1 %v1659_v34 }
 0x207   :  { %v1380_v42 = vpop.f32.mrb[2].mxu1 }
 0x208   :  { %v456_v44 = vmul.f32 %v1380_v42, %v187_v38  ;;  %v365_v45 = vpop.f32.mrb[3].mxu1  ;;  %v610_v38 = vld [vmem:[#allocation2 + $0xa8] sm:$0xff] }
 0x209   :  { %v455_v47 = vmul.f32 %v365_v45, %v186_v40  ;;  %v1635_v39 = vpack.c.bf16 %v610_v38, %v609_v37  ;;  %v611_v40 = vld [vmem:[#allocation2 + $0xb0] sm:$0xff]  ;;  %v1007_v37 = vld [vmem:[#allocation7 + $0xb8] sm:$0xff] }
 0x20a   :  { %v1639_v42 = vpack.c.bf16 %v612_v41, %v611_v40  ;;  %v1009_v40 = vld [vmem:[#allocation7 + $0xc8] sm:$0xff]  ;;  %v1010_v41 = vld [vmem:[#allocation7 + $0xd0] sm:$0xff] }
 0x20b   :  { %v459_v48 = vadd.f32 %v456_v44, %v455_v47  ;;  %v1385_v50 = vpop.f32.mrb[4].mxu1  ;;  %v614_v44 = vld [vmem:[#allocation2 + $0xc8] sm:$0xff]  ;;  %v616_v47 = vld [vmem:[#allocation2 + $0xd8] sm:$0xff] }
 0x20c   :  { %v458_v54 = vmul.f32 %v1385_v50, %v189_v43  ;;  %v446_v55 = vpop.f32.mrb[5].mxu1  ;;  %v613_v43 = vld [vmem:[#allocation2 + $0xc0] sm:$0xff] }
 0x20d   :  { %v460_v56 = vrot.slane %v459_v48, 4  ;;  %v457_v57 = vmul.f32 %v446_v55, %v188_v46  ;;  %v1643_v45 = vpack.c.bf16 %v614_v44, %v613_v43  ;;  %v615_v46 = vld [vmem:[#allocation2 + $0xd0] sm:$0xff]  ;;  %v617_v50 = vld [vmem:[#allocation2 + $0xe0] sm:$0xff] }
 0x20e   :  { %v1012_v44 = vld [vmem:[#allocation7 + $0xe0] sm:$0xff] }
 0x20f   :  { %v461_v58 = vadd.f32 %v460_v56, %v459_v48  ;;  %v466_v59 = vadd.f32 %v458_v54, %v457_v57  ;;  %v1647_v48 = vpack.c.bf16 %v616_v47, %v615_v46  ;;  %v618_v54 = vld [vmem:[#allocation2 + $0xe8] sm:$0xff]  ;;  %v619_v56 = vld [vmem:[#allocation2 + $0xf0] sm:$0xff]  ;;  %v620_v57 = vld [vmem:[#allocation2 + $0xf8] sm:$0xff] }
 0x210   :  { %v1651_v55 = vpack.c.bf16 %v618_v54, %v617_v50  ;;  %v1014_v47 = vld [vmem:[#allocation7 + $0xf0] sm:$0xff]  ;;  %v1170_v54 = vld [vmem:[%s2092_s4 + $0x1] ss:$0 sm:$0xff] }
 0x211   :  { %v462_v60 = vrot.slane %v461_v58, 2  ;;  %v467_v61 = vrot.slane %v466_v59, 4 }
 0x213   :  { %v463_v62 = vadd.f32 %v462_v60, %v461_v58  ;;  %v468_v63 = vadd.f32 %v467_v61, %v466_v59  ;;  %v1655_v58 = vpack.c.bf16 %v620_v57, %v619_v56  ;;  %v1827_v59 = vmov 1966171168  }
 0x214   :  { %v571_v60 = vunpack.c.l.s4 %v1827_v59  ;;  %v573_v61 = vlaneseq }
 0x215   :  { %v469_v0 = vrot.slane %v468_v63, 2  ;;  %v464_v1 = vrot.slane %v463_v62, 1 }
 0x217   :  { %v470_v2 = vadd.f32 %v469_v0, %v468_v63  ;;  %v465_v7 = vadd.f32 %v464_v1, %v463_v62  ;;  %v572_v62 = vunpack.c.0.s8 %v571_v60  ;;  %v574_v63 = vshrl.u32 %v573_v61, 7  ;;  %v1169_v0 = vld [vmem:[%s2096_s8] ss:$0 sm:$0xff] }
 0x219   :  { %v471_v3 = vrot.slane %v470_v2, 1  ;;  %v2003_v1 = vsub.s32 %v572_v62, %v574_v63  ;;  %v2006_v6 = vsub.s32 0, %v574_v63 }
 0x21b   :  { %v472_v8 = vadd.f32 %v471_v3, %v470_v2 }
 0x21d   :  { %v497_v10 = vsel %vm496_vm2, %v472_v8, %v465_v7 }
 0x21e   :  { %1419 = vmatmul.mubr.f32.vlgmr.msra.gmra.mrb[6].mxu1 %v497_v10 }
 0x21f   :  { %1662 = vmatpush3.bf16.msra.mxu1 %v1659_v34  ;;  %v1627_v34 = vpack.c.bf16 %v606_v32, %v605_v30  ;;  %v1003_v30 = vld [vmem:[#allocation7 + $0x98] sm:$0xff] }
 0x220   :  { %1664 = vmatprep.subr.bf16.mxu1 %v1663_v9 }
 0x221   :  { %1628 = vmatprep.subr.bf16.mxu0 %v1627_v34 }
 0x222   :  { %1630 = vmatpush3.bf16.msra.mxu0 %v1627_v34  ;;  %v1005_v34 = vld [vmem:[#allocation7 + $0xa8] sm:$0xff] }
 0x223   :  { %1666 = vmatpush3.bf16.msra.mxu1 %v1663_v9  ;;  %1632 = vmatprep.subr.bf16.mxu0 %v1631_v36  ;;  %v1698_v35 = vpack.c.bf16 %v1005_v34, %v1004_v33 }
 0x224   :  { %1668 = vmatprep.subr.bf16.mxu1 %v1667_v14 }
 0x226   :  { %1634 = vmatpush3.bf16.msra.mxu0 %v1631_v36  ;;  %v1006_v36 = vld [vmem:[#allocation7 + $0xb0] sm:$0xff] }
 0x227   :  { %1670 = vmatpush3.bf16.msra.mxu1 %v1667_v14  ;;  %1636 = vmatprep.subr.bf16.mxu0 %v1635_v39  ;;  %v1701_v38 = vpack.c.bf16 %v1007_v37, %v1006_v36 }
 0x228   :  { %1672 = vmatprep.subr.bf16.mxu1 %v1671_v17 }
 0x22a   :  { %1638 = vmatpush3.bf16.msra.mxu0 %v1635_v39  ;;  %v1008_v39 = vld [vmem:[#allocation7 + $0xc0] sm:$0xff] }
 0x22b   :  { %1674 = vmatpush3.bf16.msra.mxu1 %v1671_v17  ;;  %1640 = vmatprep.subr.bf16.mxu0 %v1639_v42 }
 0x22c   :  { %1676 = vmatprep.subr.bf16.mxu1 %v1675_v20 }
 0x22e   :  { %1642 = vmatpush3.bf16.msra.mxu0 %v1639_v42  ;;  %v1011_v42 = vld [vmem:[#allocation7 + $0xd8] sm:$0xff] }
 0x22f   :  { %1678 = vmatpush3.bf16.msra.mxu1 %v1675_v20  ;;  %1644 = vmatprep.subr.bf16.mxu0 %v1643_v45  ;;  %v1707_v43 = vpack.c.bf16 %v1011_v42, %v1010_v41 }
 0x230   :  { %1680 = vmatprep.subr.bf16.mxu1 %v1679_v23 }
 0x232   :  { %1646 = vmatpush3.bf16.msra.mxu0 %v1643_v45  ;;  %v1013_v45 = vld [vmem:[#allocation7 + $0xe8] sm:$0xff] }
 0x233   :  { %1682 = vmatpush3.bf16.msra.mxu1 %v1679_v23  ;;  %1648 = vmatprep.subr.bf16.mxu0 %v1647_v48  ;;  %v1710_v46 = vpack.c.bf16 %v1013_v45, %v1012_v44 }
 0x234   :  { %1684 = vmatprep.subr.bf16.mxu1 %v1683_v26 }
 0x236   :  { %1650 = vmatpush3.bf16.msra.mxu0 %v1647_v48  ;;  %v1015_v48 = vld [vmem:[#allocation7 + $0xf8] sm:$0xff] }
 0x237   :  { %1686 = vmatpush3.bf16.msra.mxu1 %v1683_v26  ;;  %1652 = vmatprep.subr.bf16.mxu0 %v1651_v55  ;;  %v1001_v26 = vld [vmem:[#allocation7 + $0x88] sm:$0xff]  ;;  %v1713_v50 = vpack.c.bf16 %v1015_v48, %v1014_v47 }
 0x238   :  { %1688 = vmatprep.subr.bf16.mxu1 %v1687_v29  ;;  %v1692_v28 = vpack.c.bf16 %v1001_v26, %v1000_v25 }
 0x23a   :  { %1654 = vmatpush3.bf16.msra.mxu0 %v1651_v55 }
 0x23b   :  { %1690 = vmatpush3.bf16.msra.mxu1 %v1687_v29  ;;  %1656 = vmatprep.subr.bf16.mxu0 %v1655_v58  ;;  %v1002_v29 = vld [vmem:[#allocation7 + $0x90] sm:$0xff] }
 0x23c   :  { %v1695_v32 = vpack.c.bf16 %v1003_v30, %v1002_v29 }
 0x23e   :  { %1658 = vmatpush3.bf16.msra.mxu0 %v1655_v58 }
 0x241   :  { %1454 = vmatmul.mubr.f32.vlgmr.msra.gmra.mrb[4].mxu0 %v1949_v51 }
 0x242   :  { %1456 = vmatprep.mubr.f32.mxu0 %v1955_v52 }
 0x245   :  { %1457 = vmatmul.mubr.f32.gmra.mrb[6].mxu0 %v1961_v53 }
 0x246   :  { %1496 = vmatprep.mubr.msk.f32.mxu0 %vm292_vm0, %v1172_v13 }
 0x2f1   :  { %v565_v2 = vpop.f32.mrb[6].mxu1 }
 0x2f2   :  { %v566_v3 = vadd.f32 %v1169_v0, %v565_v2  ;;  %v1420_v5 = vpop.f32.mrb[7].mxu1 }
 0x2f4   :  { %v576_v51 = vrot.slane %v566_v3, %v2003_v1 }
 0x2f6   :  { %v577_v52 = vcombine.high %v576_v51, %v576_v51  ;;  %v584_v53 = vrot.slane %v576_v51, %v2003_v1 }
 0x2f8   :  { %v591_v7 = vrot.slane %v577_v52, %v2003_v1  ;;  %v595_v8 = vrot.slane %v584_v53, %v2006_v6 }
 0x2fa   :  { %v599_v9 = vrot.slane %v591_v7, %v2006_v6  ;;  %v2013_v10 = vadd.f32 %v595_v8, %v1934_v11 }
 0x2fc   :  { %1491 = vmatprep.mubr.f32.mxu1 %v2013_v10  ;;  %v2017_v12 = vadd.f32 %v599_v9, %v1940_v49  ;;  %v1171_v49 = vld [vmem:[%s2094_s6 + $0x1] ss:$0 sm:$0xff] }
 0x2fe   :  { %1492 = vmatmul.mubr.f32.vlgmr.msra.gmra.mrb[8].mxu1 %v2017_v12 }
 0x314   :  { %v2024_v14 = vpop.f32.mrb[4].mxu0 }
 0x315   :  { %v2026_v15 = vpop.f32.mrb[5].mxu0  ;;  %v698_v55 = vadd.f32 %v2024_v14, %v1170_v54 }
 0x316   :  { %v693_v56 = vadd.f32 %v1170_v54, %v2026_v15 }
 0x317   :  { %v712_v57 = vmax.f32 %v698_v55, 0.0 }
 0x318   :  { %v2028_v16 = vpop.f32.mrb[6].mxu0  ;;  %v711_v59 = vmax.f32 %v693_v56, 0.0 }
 0x319   :  { %v2030_v11 = vpop.f32.mrb[7].mxu0  ;;  %v708_v58 = vadd.f32 %v2028_v16, %v1170_v54 }
 0x31a   :  { %v703_v60 = vadd.f32 %v1170_v54, %v2030_v11 }
 0x31b   :  { %v714_v0 = vmax.f32 %v708_v58, 0.0 }
 0x31c   :  { %v713_v2 = vmax.f32 %v703_v60, 0.0 }
 0x3d1   :  { %v1493_v17 = vpop.f32.mrb[8].mxu1 }
 0x3d2   :  { %v803_v18 = vpop.f32.mrb[9].mxu1  ;;  %v809_v19 = vadd.f32 %v1493_v17, %v1171_v49 }
 0x3d3   :  { %v804_v20 = vadd.f32 %v1171_v49, %v803_v18 }
 0x3d4   :  { %v813_v23 = vmax.f32 %v809_v19, 0.0 }
 0x3d5   :  { %v812_v21 = vmax.f32 %v804_v20, 0.0 }
 0x3d7   :  { %1494 = vmatprep.subr.mxu0 %v812_v21 }
 0x3d8   :  { %1495 = vmatpush3.msra.mxu0 %v812_v21 }
 0x3d9   :  { %1497 = vmatmul.mubr.msk.f32.vlgmr.msra.gmra.mrb[8].mxu0 %vm292_vm0, %v1173_v22  ;;  %1499 = vmatprep.subr.mxu0 %v813_v23  ;;  %v1180_v22 = vld [vmem:[%s2096_s8 + $0x1] ss:$0 sm:$0xff]  ;;  %s1828_s8 = smov [#allocation8]  }
 0x3da   :  { %1500 = vmatpush3.msra.mxu0 %v813_v23  ;;  %1501 = vmatprep.mubr.msk.f32.mxu0 %vm292_vm0, %v1174_v24  ;;  %s1153_s5 = sshll.u32 %s1828_s8, 4  ;;  %s1154_s5 = int_to_ptr.vmem [resolvable:$true] %s1153_s5 }
 0x3db   :  { %1691 = vmatprep.subr.bf16.mxu0 %v1824_v4  ;;  %s1791_s10 = scalar_lea.vmem %s1154_s5, 32  ;;  %p1796_p11 = scmp.lt.s32.totalorder %s1154_s5, %s1154_s5 }
 0x3dc   :  { %p1792_p10 = scmp.ne.s32.totalorder %s1154_s5, %s1791_s10  ;;  %p1797_p12 = scmp.lt.s32.totalorder %s1791_s10, %s1791_s10 }
 0x3dd   :  { %1502 = vmatmul.mubr.msk.f32.vlgmr.msra.gmra.mrb[10].mxu0 %vm292_vm0, %v1175_v27 }
 0x3de   :  { %1693 = vmatpush3.bf16.msra.mxu0 %v1692_v28  ;;  %1536 = vmatprep.mubr.msk.f32.mxu0 %vm1825_vm1, %v1826_v31  ;;  %v1704_v31 = vpack.c.bf16 %v1009_v40, %v1008_v39  ;;  %p1798_p13 = por %p1797_p12, %p1796_p11 }
 0x3df   :  { %1694 = vmatprep.subr.bf16.mxu0 %v1824_v4 }
 0x3e0   :  { %p1799_p0 = pnand %p1798_p13, %p1792_p10 }
 0x3e2   :  { %1696 = vmatpush3.bf16.msra.mxu0 %v1695_v32 }
 0x3e3   :  { %1697 = vmatprep.subr.bf16.mxu0 %v1824_v4 }
 0x3e6   :  { %1699 = vmatpush3.bf16.msra.mxu0 %v1698_v35 }
 0x3e7   :  { %1700 = vmatprep.subr.bf16.mxu0 %v1824_v4 }
 0x3ea   :  { %1702 = vmatpush3.bf16.msra.mxu0 %v1701_v38 }
 0x3eb   :  { %1703 = vmatprep.subr.bf16.mxu0 %v1824_v4 }
 0x3ee   :  { %1705 = vmatpush3.bf16.msra.mxu0 %v1704_v31 }
 0x3ef   :  { %1706 = vmatprep.subr.bf16.mxu0 %v1824_v4 }
 0x3f2   :  { %1708 = vmatpush3.bf16.msra.mxu0 %v1707_v43 }
 0x3f3   :  { %1709 = vmatprep.subr.bf16.mxu0 %v1824_v4 }
 0x3f6   :  { %1711 = vmatpush3.bf16.msra.mxu0 %v1710_v46 }
 0x3f7   :  { %1712 = vmatprep.subr.bf16.mxu0 %v1824_v4 }
 0x3fa   :  { %1714 = vmatpush3.bf16.msra.mxu0 %v1713_v50 }
 0x4ac   :  { %v1498_v61 = vpop.f32.mrb[8].mxu0 }
 0x4ad   :  { %v982_v4 = vmul.f32 %v1498_v61, %v712_v57  ;;  %v891_v62 = vpop.f32.mrb[9].mxu0 }
 0x4ae   :  { %v981_v63 = vmul.f32 %v891_v62, %v711_v59 }
 0x4b0   :  { %v985_v3 = vadd.f32 %v982_v4, %v981_v63  ;;  %v1503_v5 = vpop.f32.mrb[10].mxu0 }
 0x4b1   :  { %v984_v51 = vmul.f32 %v1503_v5, %v714_v0  ;;  %v972_v52 = vpop.f32.mrb[11].mxu0 }
 0x4b2   :  { %v986_v53 = vrot.slane %v985_v3, 4  ;;  %v983_v7 = vmul.f32 %v972_v52, %v713_v2 }
 0x4b4   :  { %v987_v8 = vadd.f32 %v986_v53, %v985_v3  ;;  %v992_v9 = vadd.f32 %v984_v51, %v983_v7 }
 0x4b6   :  { %v988_v13 = vrot.slane %v987_v8, 2  ;;  %v993_v14 = vrot.slane %v992_v9, 4 }
 0x4b8   :  { %v989_v15 = vadd.f32 %v988_v13, %v987_v8  ;;  %v994_v16 = vadd.f32 %v993_v14, %v992_v9 }
 0x4ba   :  { %v995_v49 = vrot.slane %v994_v16, 2  ;;  %v990_v11 = vrot.slane %v989_v15, 1 }
 0x4bc   :  { %v996_v17 = vadd.f32 %v995_v49, %v994_v16  ;;  %v991_v19 = vadd.f32 %v990_v11, %v989_v15 }
 0x4be   :  { %v997_v18 = vrot.slane %v996_v17, 1 }
 0x4c0   :  { %v998_v20 = vadd.f32 %v997_v18, %v996_v17 }
 0x4c2   :  { %v1023_v21 = vsel %vm496_vm2, %v998_v20, %v991_v19 }
 0x4c3   :  { %1537 = vmatmul.mubr.f32.vlgmr.msra.gmra.mrb[12].mxu0 %v1023_v21 }
 0x596   :  { %v1091_v23 = vpop.f32.mrb[12].mxu0 }
 0x597   :  { %v1092_v24 = vadd.f32 %v1180_v22, %v1091_v23  ;;  %v1538_v25 = vpop.f32.mrb[13].mxu0 }
 0x599   :  { %v1102_v26 = vrot.slane %v1092_v24, %v2003_v1 }
 0x59b   :  { %v1103_v27 = vcombine.high %v1102_v26, %v1102_v26  ;;  %v1110_v28 = vrot.slane %v1102_v26, %v2003_v1 }
 0x59d   :  { %v1117_v29 = vrot.slane %v1103_v27, %v2003_v1  ;;  %v1121_v30 = vrot.slane %v1110_v28, %v2006_v6 }
 0x59f   :  { %v1125_v32 = vrot.slane %v1117_v29, %v2006_v6  ;;  %v1128_v33 = vadd.f32 %v1121_v30, %v2013_v10 }
 0x5a1   :  { %v1129_v34 = vadd.f32 %v1125_v32, %v2017_v12  ;;  %v1130_v35 = vrot.slane %v1128_v33, 4 }
 0x5a3   :  { %v1131_v36 = vadd.f32 %v1130_v35, %v1128_v33  ;;  %v1136_v37 = vrot.slane %v1129_v34, 4 }
 0x5a5   :  { %v1132_v38 = vrot.slane %v1131_v36, 2  ;;  %v1137_v39 = vadd.f32 %v1136_v37, %v1129_v34 }
 0x5a7   :  { %v1133_v40 = vadd.f32 %v1132_v38, %v1131_v36  ;;  %v1138_v31 = vrot.slane %v1137_v39, 2 }
 0x5a9   :  { %v1134_v41 = vrot.slane %v1133_v40, 1  ;;  %v1139_v42 = vadd.f32 %v1138_v31, %v1137_v39 }
 0x5ab   :  { %v1140_v43 = vrot.slane %v1139_v42, 1  ;;  %v1135_v1 = vadd.f32 %v1134_v41, %v1133_v40 }
 0x5ad   :  { %v1141_v44 = vadd.f32 %v1140_v43, %v1139_v42 }
 0x5af   :  { %v1144_v6 = vsel %vm496_vm2, %v1141_v44, %v1135_v1 }
 0x5b0   :  { %1146 = vst [vmem:[#allocation8] sm:$0x3] %v1144_v6 }
 0x5b1   :  { %1802 = shalt.err (!%p1799_p0)
}
 0x5b2   :  { %s1803_s16 = scalar_lea.hbm %s2097_s9, 32 }
 0x5b3   :  { %p1804_p1 = scmp.ne.s32.totalorder %s2097_s9, %s1803_s16  ;;  %p1807_p2 = scmp.lt.u32.totalorder %s1803_s16, %s2097_s9 }
 0x5b5   :  { %p1809_p3 = pnand %p1807_p2, %p1804_p1 }
 0x5b7   :  { %1812 = shalt.err (!%p1809_p3)
}
 0x5b8   :  { %1156 = dma.vmem_to_hbm [thread:$0]  %s1154_s5, 32, %s2097_s9, [#allocation4]  }
 0x5b9   :  { %1817 = dma.done.wait [#allocation4], 32  }
 0x5ba   :  { %1818 = vsyncadd [#allocation4], 4294967264 }
 0x5bb   :  { %1160 = vsyncpa [#allocation3], 1 }
 0x5bc   :  { %1161 = vsyncpa [#allocation6], 1 }
 0x5bd   :  { %1162 = vsyncpa [#allocation4], 1 }

</bundles_post_ra>
